<compile_context>
chip_gen: v7x
topology: tpu7x:2x2x1
jax: 0.10.0
libtpu: 0.0.40
codegen_flags: <defaults>
</compile_context>

<pallas_src>
import math
import functools

import jax
import jax.numpy as jnp
from jax.experimental import pallas as pl
from jax.experimental.pallas import tpu as pltpu


def _bert_self_attention_kernel(mask_ref, x_ref,
                                wq_ref, bq_ref, wk_ref, bk_ref, wv_ref, bv_ref,
                                out_ref,
                                k_all, v_all,
                                *, num_heads, head_size, heads_per_group,
                                seq_len, q_tile, scale, compute_dtype):
    # Blocks:
    #   mask_ref: (1, 1, S) f32      x_ref: (1, S, H) f32 (resident across qi)
    #   w*_ref:   (H, H) bf16        b*_ref: (1, H) f32
    #   out_ref:  (1, TQ, H)
    # Scratch (persistent across grid steps):
    #   k_all / v_all: (S, H) compute_dtype   -- lane-dense K/V for all heads
    first_q_tile = pl.program_id(1) == 0

    # ---- K/V projections, full hidden width, once per batch row.
    @pl.when(first_q_tile)
    def _():
        xb = x_ref[0].astype(compute_dtype)                          # (S, H)
        k = jnp.dot(xb, wk_ref[...],
                    preferred_element_type=jnp.float32) + bk_ref[...]
        v = jnp.dot(xb, wv_ref[...],
                    preferred_element_type=jnp.float32) + bv_ref[...]
        k_all[...] = k.astype(compute_dtype)
        v_all[...] = v.astype(compute_dtype)

    # ---- Q projection for this query tile, full hidden width; fold 1/sqrt(d)
    #      into q once (not into the (TQ,S) scores).
    q_start = pl.multiple_of(pl.program_id(1) * q_tile, q_tile)
    xq = x_ref[0, pl.ds(q_start, q_tile), :].astype(compute_dtype)   # (TQ, H)
    q = jnp.dot(xq, wq_ref[...],
                preferred_element_type=jnp.float32) + bq_ref[...]
    q = (q * scale).astype(compute_dtype)                            # (TQ, H)

    # Hoist the (1,S)->(TQ,S) mask broadcast out of the head loop
    # (broadcast_in_dim is not CSE'd).
    mask_b = jnp.broadcast_to(mask_ref[0], (q_tile, seq_len))        # (TQ, S) f32

    num_groups = num_heads // heads_per_group
    group_width = heads_per_group * head_size
    for g in range(num_groups):
        ctx_parts = []
        for hl in range(heads_per_group):
            lo = (g * heads_per_group + hl) * head_size
            qh = q[:, lo:lo + head_size]                             # (TQ, d)
            kh = k_all[:, lo:lo + head_size]                         # (S, d)
            vh = v_all[:, lo:lo + head_size]                         # (S, d)

            # q @ k^T without materializing a transpose: contract over d.
            scores = jax.lax.dot_general(
                qh, kh, (((1,), (1,)), ((), ())),
                preferred_element_type=jnp.float32)                  # (TQ, S)
            scores = scores + mask_b

            # Numerically-stable softmax; normalization deferred to the context.
            m = jnp.max(scores, axis=-1, keepdims=True)
            e = jnp.exp(scores - m)
            denom = jnp.sum(e, axis=-1, keepdims=True)
            ctx = jnp.dot(e.astype(compute_dtype), vh,
                          preferred_element_type=jnp.float32)        # (TQ, d)
            ctx_parts.append(ctx * pl.reciprocal(denom, approx=True))

        group_ctx = (ctx_parts[0] if heads_per_group == 1
                     else jnp.concatenate(ctx_parts, axis=-1))       # (TQ, gw)
        go = g * group_width
        out_ref[0, :, go:go + group_width] = group_ctx.astype(out_ref.dtype)


def _pick_q_tile(seq_len):
    # Prefer 256 (VMEM/spill-aware, esp. v7x), then 512, then 128.
    for t in (256, 512, 128):
        if seq_len % t == 0:
            return t
    return seq_len


def _pick_heads_per_group(num_heads, head_size):
    # Group heads so each context store is up to 128 lanes wide (128-aligned
    # when head_size divides 128); fall back to one head per group.
    max_group = max(1, 128 // head_size) if head_size <= 128 else 1
    for hpg in range(min(num_heads, max_group), 0, -1):
        if num_heads % hpg == 0:
            return hpg
    return 1


def _vmem_limit_bytes(S, H, TQ, compute_itemsize, out_itemsize):
    x_blk = 2 * S * H * 4                       # (1,S,H) f32, double-buffered
    mask = 2 * S * 4
    weights = 2 * (3 * H * H * compute_itemsize + 3 * H * 4)
    out_blk = 2 * TQ * H * out_itemsize
    kv_scr = 2 * S * H * compute_itemsize
    interm = 3 * TQ * S * 4 + 4 * TQ * H * 4    # mask_b / scores / e + q / ctx
    est = x_blk + mask + weights + out_blk + kv_scr + interm
    # Headroom for Mosaic internal scratch; cap below v7x's 64 MiB physical VMEM.
    return int(min(max(est * 1.5, 16 * 1024 * 1024), 48 * 1024 * 1024))


def bert_self_attention(hidden_states, attention_mask, params,
                        num_heads, head_size, *,
                        compute_dtype=jnp.bfloat16, out_dtype=jnp.float32,
                        q_tile=None):
    """hidden_states: (B, S, H); attention_mask: (B, 1, 1, S) additive mask.

    out_dtype=jnp.bfloat16 halves output HBM writeback if the downstream
    consumer (BertSelfOutput dense) accepts bf16.
    """
    B, S, H = hidden_states.shape
    assert H == num_heads * head_size

    wq, bq, wk, bk, wv, bv = params

    # nn.Linear computes x @ W.T + b; pass W.T (H_in, H_out) at full width.
    wq_t = wq.T.astype(compute_dtype)
    wk_t = wk.T.astype(compute_dtype)
    wv_t = wv.T.astype(compute_dtype)
    bq_r = bq.reshape(1, H).astype(jnp.float32)
    bk_r = bk.reshape(1, H).astype(jnp.float32)
    bv_r = bv.reshape(1, H).astype(jnp.float32)

    mask3d = attention_mask.reshape(B, 1, S).astype(jnp.float32)

    TQ = _pick_q_tile(S) if q_tile is None else q_tile
    assert S % TQ == 0
    n_q = S // TQ
    heads_per_group = _pick_heads_per_group(num_heads, head_size)

    kernel = functools.partial(
        _bert_self_attention_kernel,
        num_heads=num_heads, head_size=head_size,
        heads_per_group=heads_per_group,
        seq_len=S, q_tile=TQ,
        scale=1.0 / math.sqrt(head_size), compute_dtype=compute_dtype)

    w_spec = pl.BlockSpec((H, H), lambda b, qi: (0, 0))
    bias_spec = pl.BlockSpec((1, H), lambda b, qi: (0, 0))

    compute_itemsize = jnp.dtype(compute_dtype).itemsize
    out_itemsize = jnp.dtype(out_dtype).itemsize

    out = pl.pallas_call(
        kernel,
        out_shape=jax.ShapeDtypeStruct((B, S, H), out_dtype),
        grid_spec=pltpu.PrefetchScalarGridSpec(
            num_scalar_prefetch=0,
            grid=(B, n_q),
            in_specs=[
                pl.BlockSpec((1, 1, S), lambda b, qi: (b, 0, 0)),   # mask
                pl.BlockSpec((1, S, H), lambda b, qi: (b, 0, 0)),   # x (resident)
                w_spec, bias_spec,                                  # query proj
                w_spec, bias_spec,                                  # key proj
                w_spec, bias_spec,                                  # value proj
            ],
            out_specs=pl.BlockSpec((1, TQ, H), lambda b, qi: (b, qi, 0)),
            scratch_shapes=[
                pltpu.VMEM((S, H), compute_dtype),                  # K, all heads
                pltpu.VMEM((S, H), compute_dtype),                  # V, all heads
            ],
        ),
        compiler_params=pltpu.CompilerParams(
            dimension_semantics=("parallel", "arbitrary"),
            vmem_limit_bytes=_vmem_limit_bytes(S, H, TQ, compute_itemsize,
                                               out_itemsize),
        ),
    )(mask3d, hidden_states, wq_t, bq_r, wk_t, bk_r, wv_t, bv_r)
    return out


def _reference(hidden_states, attention_mask, params, num_heads, head_size):
    """Pure-JAX f32 reference mirroring the PyTorch module (eval mode)."""
    B, S, H = hidden_states.shape
    wq, bq, wk, bk, wv, bv = params

    def proj(w, b):
        y = hidden_states @ w.T + b                      # (B, S, H)
        y = y.reshape(B, S, num_heads, head_size)
        return y.transpose(0, 2, 1, 3)                   # (B, nh, S, d)

    q, k, v = proj(wq, bq), proj(wk, bk), proj(wv, bv)
    scores = jnp.einsum("bhqd,bhkd->bhqk", q, k) / math.sqrt(head_size)
    scores = scores + attention_mask                     # (B,1,1,S) broadcast
    probs = jax.nn.softmax(scores, axis=-1)
    ctx = jnp.einsum("bhqk,bhkd->bhqd", probs, v)
    ctx = ctx.transpose(0, 2, 1, 3).reshape(B, S, H)
    return ctx


if __name__ == "__main__":
    # small config: batch=2, seq=8, hidden=32, heads=4, head_size=8
    B, S, H = 2, 8, 32
    NUM_HEADS, HEAD_SIZE = 4, 8

    key = jax.random.PRNGKey(0)
    keys = jax.random.split(key, 8)

    hidden_states = jax.random.normal(keys[0], (B, S, H), dtype=jnp.float32)

    # additive BERT-style mask: 0 for attended positions, -10000 for masked ones
    keep = (jax.random.uniform(keys[1], (B, S)) > 0.2).astype(jnp.float32)
    attention_mask = ((1.0 - keep) * -10000.0).reshape(B, 1, 1, S)

    init_scale = 0.02
    wq = init_scale * jax.random.normal(keys[2], (H, H), dtype=jnp.float32)
    wk = init_scale * jax.random.normal(keys[3], (H, H), dtype=jnp.float32)
    wv = init_scale * jax.random.normal(keys[4], (H, H), dtype=jnp.float32)
    bq = init_scale * jax.random.normal(keys[5], (H,), dtype=jnp.float32)
    bk = init_scale * jax.random.normal(keys[6], (H,), dtype=jnp.float32)
    bv = init_scale * jax.random.normal(keys[7], (H,), dtype=jnp.float32)
    params = (wq, bq, wk, bk, wv, bv)

    out = bert_self_attention(hidden_states, attention_mask, params,
                              NUM_HEADS, HEAD_SIZE)
    out = jax.block_until_ready(out)

    ref = _reference(hidden_states, attention_mask, params, NUM_HEADS, HEAD_SIZE)
    assert out.shape == (B, S, H)
    max_err = float(jnp.max(jnp.abs(out - ref)))
    # bf16 matmul inputs + approx reciprocal -> loosened vs f32 reference.
    assert jnp.allclose(out, ref, atol=2e-2, rtol=2e-2), (
        f"mismatch vs reference (max abs err {max_err:.3e})")

    print("KERNEL_OK")
</pallas_src>

<mosaic_0001>
module attributes {stable_mosaic.version = 11 : i64} {
  func.func @_bert_self_attention_kernel(%arg0: i32, %arg1: i32, %arg2: memref<1x1x8xf32, #tpu.memory_space<vmem>>, %arg3: memref<1x8x32xf32, #tpu.memory_space<vmem>>, %arg4: memref<32x32xbf16, #tpu.memory_space<vmem>>, %arg5: memref<1x32xf32, #tpu.memory_space<vmem>>, %arg6: memref<32x32xbf16, #tpu.memory_space<vmem>>, %arg7: memref<1x32xf32, #tpu.memory_space<vmem>>, %arg8: memref<32x32xbf16, #tpu.memory_space<vmem>>, %arg9: memref<1x32xf32, #tpu.memory_space<vmem>>, %arg10: memref<1x8x32xf32, #tpu.memory_space<vmem>>, %arg11: memref<8x32xbf16, #tpu.memory_space<vmem>>, %arg12: memref<8x32xbf16, #tpu.memory_space<vmem>>) attributes {dimension_semantics = [#tpu.dimension_semantics<parallel>, #tpu.dimension_semantics<arbitrary>], iteration_bounds = array<i64: 2, 1>, scalar_prefetch = 0 : i64, scratch_operands = 2 : i64, tpu.core_type = #tpu.core_type<tc>, window_params = [{transform_indices = @transform_0, window_bounds = array<i64: 1, 1, 8>}, {transform_indices = @transform_1, window_bounds = array<i64: 1, 8, 32>}, {pipeline_mode = #tpu.pipeline_mode<synchronous>, transform_indices = @transform_2, window_bounds = array<i64: 32, 32>}, {pipeline_mode = #tpu.pipeline_mode<synchronous>, transform_indices = @transform_3, window_bounds = array<i64: 1, 32>}, {pipeline_mode = #tpu.pipeline_mode<synchronous>, transform_indices = @transform_4, window_bounds = array<i64: 32, 32>}, {pipeline_mode = #tpu.pipeline_mode<synchronous>, transform_indices = @transform_5, window_bounds = array<i64: 1, 32>}, {pipeline_mode = #tpu.pipeline_mode<synchronous>, transform_indices = @transform_6, window_bounds = array<i64: 32, 32>}, {pipeline_mode = #tpu.pipeline_mode<synchronous>, transform_indices = @transform_7, window_bounds = array<i64: 1, 32>}, {transform_indices = @transform_8, window_bounds = array<i64: 1, 8, 32>}]} {
    %c0_i32 = arith.constant 0 : i32
    %0 = arith.cmpi eq, %arg1, %c0_i32 : i32
    %1 = arith.extui %0 : i1 to i32
    %c0_i32_0 = arith.constant 0 : i32
    %2 = arith.cmpi ne, %1, %c0_i32_0 : i32
    scf.if %2 {
      %c0_42 = arith.constant 0 : index
      %c0_43 = arith.constant 0 : index
      %c0_44 = arith.constant 0 : index
      %93 = vector.load %arg3[%c0_42, %c0_43, %c0_44] : memref<1x8x32xf32, #tpu.memory_space<vmem>>, vector<1x8x32xf32>
      %94 = vector.shape_cast %93 : vector<1x8x32xf32> to vector<8x32xf32>
      %95 = arith.truncf %94 : vector<8x32xf32> to vector<8x32xbf16>
      %c0_45 = arith.constant 0 : index
      %c0_46 = arith.constant 0 : index
      %96 = vector.load %arg6[%c0_45, %c0_46] : memref<32x32xbf16, #tpu.memory_space<vmem>>, vector<32x32xbf16>
      %cst_47 = arith.constant dense<0.000000e+00> : vector<8x32xf32>
      %97 = tpu.matmul %95, %96, %cst_47 {dimension_numbers = #tpu.dot_dimension_numbers<[1], [0], [0], [1], [0, 0, 1, 1], [], []>} : vector<8x32xbf16>, vector<32x32xbf16>, vector<8x32xf32> -> vector<8x32xf32>
      %c0_48 = arith.constant 0 : index
      %c0_49 = arith.constant 0 : index
      %98 = vector.load %arg7[%c0_48, %c0_49] : memref<1x32xf32, #tpu.memory_space<vmem>>, vector<1x32xf32>
      %99 = vector.broadcast %98 : vector<1x32xf32> to vector<8x32xf32>
      %100 = arith.addf %97, %99 : vector<8x32xf32>
      %c0_50 = arith.constant 0 : index
      %c0_51 = arith.constant 0 : index
      %101 = vector.load %arg8[%c0_50, %c0_51] : memref<32x32xbf16, #tpu.memory_space<vmem>>, vector<32x32xbf16>
      %cst_52 = arith.constant dense<0.000000e+00> : vector<8x32xf32>
      %102 = tpu.matmul %95, %101, %cst_52 {dimension_numbers = #tpu.dot_dimension_numbers<[1], [0], [0], [1], [0, 0, 1, 1], [], []>} : vector<8x32xbf16>, vector<32x32xbf16>, vector<8x32xf32> -> vector<8x32xf32>
      %c0_53 = arith.constant 0 : index
      %c0_54 = arith.constant 0 : index
      %103 = vector.load %arg9[%c0_53, %c0_54] : memref<1x32xf32, #tpu.memory_space<vmem>>, vector<1x32xf32>
      %104 = vector.broadcast %103 : vector<1x32xf32> to vector<8x32xf32>
      %105 = arith.addf %102, %104 : vector<8x32xf32>
      %106 = arith.truncf %100 : vector<8x32xf32> to vector<8x32xbf16>
      %c0_55 = arith.constant 0 : index
      %c0_56 = arith.constant 0 : index
      %107 = vector.load %arg11[%c0_55, %c0_56] : memref<8x32xbf16, #tpu.memory_space<vmem>>, vector<8x32xbf16>
      tpu.vector_store %arg11[%c0_55, %c0_56], %106 {strides = array<i32>} : memref<8x32xbf16, #tpu.memory_space<vmem>>, vector<8x32xbf16>,
      %108 = arith.truncf %105 : vector<8x32xf32> to vector<8x32xbf16>
      %c0_57 = arith.constant 0 : index
      %c0_58 = arith.constant 0 : index
      %109 = vector.load %arg12[%c0_57, %c0_58] : memref<8x32xbf16, #tpu.memory_space<vmem>>, vector<8x32xbf16>
      tpu.vector_store %arg12[%c0_57, %c0_58], %108 {strides = array<i32>} : memref<8x32xbf16, #tpu.memory_space<vmem>>, vector<8x32xbf16>,
    } else {
    }
    %c8_i32 = arith.constant 8 : i32
    %3 = arith.muli %arg1, %c8_i32 : i32
    %4 = tpu.assume_multiple %3, 8 : i32
    %c0 = arith.constant 0 : index
    %5 = arith.index_cast %4 : i32 to index
    %c0_1 = arith.constant 0 : index
    %6 = vector.load %arg3[%c0, %5, %c0_1] : memref<1x8x32xf32, #tpu.memory_space<vmem>>, vector<1x8x32xf32>
    %7 = vector.shape_cast %6 : vector<1x8x32xf32> to vector<8x32xf32>
    %8 = arith.truncf %7 : vector<8x32xf32> to vector<8x32xbf16>
    %c0_2 = arith.constant 0 : index
    %c0_3 = arith.constant 0 : index
    %9 = vector.load %arg4[%c0_2, %c0_3] : memref<32x32xbf16, #tpu.memory_space<vmem>>, vector<32x32xbf16>
    %cst = arith.constant dense<0.000000e+00> : vector<8x32xf32>
    %10 = tpu.matmul %8, %9, %cst {dimension_numbers = #tpu.dot_dimension_numbers<[1], [0], [0], [1], [0, 0, 1, 1], [], []>} : vector<8x32xbf16>, vector<32x32xbf16>, vector<8x32xf32> -> vector<8x32xf32>
    %c0_4 = arith.constant 0 : index
    %c0_5 = arith.constant 0 : index
    %11 = vector.load %arg5[%c0_4, %c0_5] : memref<1x32xf32, #tpu.memory_space<vmem>>, vector<1x32xf32>
    %12 = vector.broadcast %11 : vector<1x32xf32> to vector<8x32xf32>
    %13 = arith.addf %10, %12 : vector<8x32xf32>
    %cst_6 = arith.constant 0.353553385 : f32
    %14 = vector.broadcast %cst_6 : f32 to vector<8x32xf32>
    %15 = arith.mulf %13, %14 : vector<8x32xf32>
    %16 = arith.truncf %15 : vector<8x32xf32> to vector<8x32xbf16>
    %c0_7 = arith.constant 0 : index
    %c0_8 = arith.constant 0 : index
    %c0_9 = arith.constant 0 : index
    %17 = vector.load %arg2[%c0_7, %c0_8, %c0_9] : memref<1x1x8xf32, #tpu.memory_space<vmem>>, vector<1x1x8xf32>
    %18 = vector.shape_cast %17 : vector<1x1x8xf32> to vector<1x8xf32>
    %19 = vector.shape_cast %18 : vector<1x8xf32> to vector<1x8xf32>
    %20 = vector.broadcast %19 : vector<1x8xf32> to vector<8x8xf32>
    %21 = vector.extract_strided_slice %16 {offsets = [0, 0], sizes = [8, 8], strides = [1, 1]} : vector<8x32xbf16> to vector<8x8xbf16>
    %c0_10 = arith.constant 0 : index
    %c0_11 = arith.constant 0 : index
    %22 = vector.load %arg11[%c0_10, %c0_11] : memref<8x32xbf16, #tpu.memory_space<vmem>>, vector<8x8xbf16>
    %c0_12 = arith.constant 0 : index
    %c0_13 = arith.constant 0 : index
    %23 = vector.load %arg12[%c0_12, %c0_13] : memref<8x32xbf16, #tpu.memory_space<vmem>>, vector<8x8xbf16>
    %cst_14 = arith.constant dense<0.000000e+00> : vector<8x8xf32>
    %24 = tpu.matmul %21, %22, %cst_14 {dimension_numbers = #tpu.dot_dimension_numbers<[1], [1], [0], [0], [0, 0, 1, 0], [], []>} : vector<8x8xbf16>, vector<8x8xbf16>, vector<8x8xf32> -> vector<8x8xf32>
    %25 = arith.addf %24, %20 : vector<8x8xf32>
    %cst_15 = arith.constant dense<0xFF800000> : vector<8xf32>
    %26 = vector.multi_reduction <maximumf>, %25, %cst_15 [1] : vector<8x8xf32> to vector<8xf32>
    %27 = vector.shape_cast %26 : vector<8xf32> to vector<8x1xf32>
    %28 = vector.broadcast %27 : vector<8x1xf32> to vector<8x8xf32>
    %29 = arith.subf %25, %28 : vector<8x8xf32>
    %30 = math.exp %29 : vector<8x8xf32>
    %cst_16 = arith.constant dense<0.000000e+00> : vector<8xf32>
    %31 = vector.multi_reduction <add>, %30, %cst_16 [1] : vector<8x8xf32> to vector<8xf32>
    %32 = vector.shape_cast %31 : vector<8xf32> to vector<8x1xf32>
    %33 = arith.truncf %30 : vector<8x8xf32> to vector<8x8xbf16>
    %cst_17 = arith.constant dense<0.000000e+00> : vector<8x8xf32>
    %34 = tpu.matmul %33, %23, %cst_17 {dimension_numbers = #tpu.dot_dimension_numbers<[1], [0], [0], [1], [0, 0, 1, 1], [], []>} : vector<8x8xbf16>, vector<8x8xbf16>, vector<8x8xf32> -> vector<8x8xf32>
    %35 = tpu.reciprocal %32 {approx = true} : vector<8x1xf32> -> vector<8x1xf32>
    %36 = vector.broadcast %35 : vector<8x1xf32> to vector<8x8xf32>
    %37 = arith.mulf %34, %36 : vector<8x8xf32>
    %38 = vector.extract_strided_slice %16 {offsets = [0, 8], sizes = [8, 8], strides = [1, 1]} : vector<8x32xbf16> to vector<8x8xbf16>
    %c0_18 = arith.constant 0 : index
    %c8 = arith.constant 8 : index
    %39 = vector.load %arg11[%c0_18, %c8] : memref<8x32xbf16, #tpu.memory_space<vmem>>, vector<8x8xbf16>
    %c0_19 = arith.constant 0 : index
    %c8_20 = arith.constant 8 : index
    %40 = vector.load %arg12[%c0_19, %c8_20] : memref<8x32xbf16, #tpu.memory_space<vmem>>, vector<8x8xbf16>
    %cst_21 = arith.constant dense<0.000000e+00> : vector<8x8xf32>
    %41 = tpu.matmul %38, %39, %cst_21 {dimension_numbers = #tpu.dot_dimension_numbers<[1], [1], [0], [0], [0, 0, 1, 0], [], []>} : vector<8x8xbf16>, vector<8x8xbf16>, vector<8x8xf32> -> vector<8x8xf32>
    %42 = arith.addf %41, %20 : vector<8x8xf32>
    %cst_22 = arith.constant dense<0xFF800000> : vector<8xf32>
    %43 = vector.multi_reduction <maximumf>, %42, %cst_22 [1] : vector<8x8xf32> to vector<8xf32>
    %44 = vector.shape_cast %43 : vector<8xf32> to vector<8x1xf32>
    %45 = vector.broadcast %44 : vector<8x1xf32> to vector<8x8xf32>
    %46 = arith.subf %42, %45 : vector<8x8xf32>
    %47 = math.exp %46 : vector<8x8xf32>
    %cst_23 = arith.constant dense<0.000000e+00> : vector<8xf32>
    %48 = vector.multi_reduction <add>, %47, %cst_23 [1] : vector<8x8xf32> to vector<8xf32>
    %49 = vector.shape_cast %48 : vector<8xf32> to vector<8x1xf32>
    %50 = arith.truncf %47 : vector<8x8xf32> to vector<8x8xbf16>
    %cst_24 = arith.constant dense<0.000000e+00> : vector<8x8xf32>
    %51 = tpu.matmul %50, %40, %cst_24 {dimension_numbers = #tpu.dot_dimension_numbers<[1], [0], [0], [1], [0, 0, 1, 1], [], []>} : vector<8x8xbf16>, vector<8x8xbf16>, vector<8x8xf32> -> vector<8x8xf32>
    %52 = tpu.reciprocal %49 {approx = true} : vector<8x1xf32> -> vector<8x1xf32>
    %53 = vector.broadcast %52 : vector<8x1xf32> to vector<8x8xf32>
    %54 = arith.mulf %51, %53 : vector<8x8xf32>
    %55 = vector.extract_strided_slice %16 {offsets = [0, 16], sizes = [8, 8], strides = [1, 1]} : vector<8x32xbf16> to vector<8x8xbf16>
    %c0_25 = arith.constant 0 : index
    %c16 = arith.constant 16 : index
    %56 = vector.load %arg11[%c0_25, %c16] : memref<8x32xbf16, #tpu.memory_space<vmem>>, vector<8x8xbf16>
    %c0_26 = arith.constant 0 : index
    %c16_27 = arith.constant 16 : index
    %57 = vector.load %arg12[%c0_26, %c16_27] : memref<8x32xbf16, #tpu.memory_space<vmem>>, vector<8x8xbf16>
    %cst_28 = arith.constant dense<0.000000e+00> : vector<8x8xf32>
    %58 = tpu.matmul %55, %56, %cst_28 {dimension_numbers = #tpu.dot_dimension_numbers<[1], [1], [0], [0], [0, 0, 1, 0], [], []>} : vector<8x8xbf16>, vector<8x8xbf16>, vector<8x8xf32> -> vector<8x8xf32>
    %59 = arith.addf %58, %20 : vector<8x8xf32>
    %cst_29 = arith.constant dense<0xFF800000> : vector<8xf32>
    %60 = vector.multi_reduction <maximumf>, %59, %cst_29 [1] : vector<8x8xf32> to vector<8xf32>
    %61 = vector.shape_cast %60 : vector<8xf32> to vector<8x1xf32>
    %62 = vector.broadcast %61 : vector<8x1xf32> to vector<8x8xf32>
    %63 = arith.subf %59, %62 : vector<8x8xf32>
    %64 = math.exp %63 : vector<8x8xf32>
    %cst_30 = arith.constant dense<0.000000e+00> : vector<8xf32>
    %65 = vector.multi_reduction <add>, %64, %cst_30 [1] : vector<8x8xf32> to vector<8xf32>
    %66 = vector.shape_cast %65 : vector<8xf32> to vector<8x1xf32>
    %67 = arith.truncf %64 : vector<8x8xf32> to vector<8x8xbf16>
    %cst_31 = arith.constant dense<0.000000e+00> : vector<8x8xf32>
    %68 = tpu.matmul %67, %57, %cst_31 {dimension_numbers = #tpu.dot_dimension_numbers<[1], [0], [0], [1], [0, 0, 1, 1], [], []>} : vector<8x8xbf16>, vector<8x8xbf16>, vector<8x8xf32> -> vector<8x8xf32>
    %69 = tpu.reciprocal %66 {approx = true} : vector<8x1xf32> -> vector<8x1xf32>
    %70 = vector.broadcast %69 : vector<8x1xf32> to vector<8x8xf32>
    %71 = arith.mulf %68, %70 : vector<8x8xf32>
    %72 = vector.extract_strided_slice %16 {offsets = [0, 24], sizes = [8, 8], strides = [1, 1]} : vector<8x32xbf16> to vector<8x8xbf16>
    %c0_32 = arith.constant 0 : index
    %c24 = arith.constant 24 : index
    %73 = vector.load %arg11[%c0_32, %c24] : memref<8x32xbf16, #tpu.memory_space<vmem>>, vector<8x8xbf16>
    %c0_33 = arith.constant 0 : index
    %c24_34 = arith.constant 24 : index
    %74 = vector.load %arg12[%c0_33, %c24_34] : memref<8x32xbf16, #tpu.memory_space<vmem>>, vector<8x8xbf16>
    %cst_35 = arith.constant dense<0.000000e+00> : vector<8x8xf32>
    %75 = tpu.matmul %72, %73, %cst_35 {dimension_numbers = #tpu.dot_dimension_numbers<[1], [1], [0], [0], [0, 0, 1, 0], [], []>} : vector<8x8xbf16>, vector<8x8xbf16>, vector<8x8xf32> -> vector<8x8xf32>
    %76 = arith.addf %75, %20 : vector<8x8xf32>
    %cst_36 = arith.constant dense<0xFF800000> : vector<8xf32>
    %77 = vector.multi_reduction <maximumf>, %76, %cst_36 [1] : vector<8x8xf32> to vector<8xf32>
    %78 = vector.shape_cast %77 : vector<8xf32> to vector<8x1xf32>
    %79 = vector.broadcast %78 : vector<8x1xf32> to vector<8x8xf32>
    %80 = arith.subf %76, %79 : vector<8x8xf32>
    %81 = math.exp %80 : vector<8x8xf32>
    %cst_37 = arith.constant dense<0.000000e+00> : vector<8xf32>
    %82 = vector.multi_reduction <add>, %81, %cst_37 [1] : vector<8x8xf32> to vector<8xf32>
    %83 = vector.shape_cast %82 : vector<8xf32> to vector<8x1xf32>
    %84 = arith.truncf %81 : vector<8x8xf32> to vector<8x8xbf16>
    %cst_38 = arith.constant dense<0.000000e+00> : vector<8x8xf32>
    %85 = tpu.matmul %84, %74, %cst_38 {dimension_numbers = #tpu.dot_dimension_numbers<[1], [0], [0], [1], [0, 0, 1, 1], [], []>} : vector<8x8xbf16>, vector<8x8xbf16>, vector<8x8xf32> -> vector<8x8xf32>
    %86 = tpu.reciprocal %83 {approx = true} : vector<8x1xf32> -> vector<8x1xf32>
    %87 = vector.broadcast %86 : vector<8x1xf32> to vector<8x8xf32>
    %88 = arith.mulf %85, %87 : vector<8x8xf32>
    %89 = tpu.concatenate %37, %54, %71, %88 in 1 : vector<8x8xf32>, vector<8x8xf32>, vector<8x8xf32>, vector<8x8xf32> -> vector<8x32xf32>
    %c0_39 = arith.constant 0 : index
    %c0_40 = arith.constant 0 : index
    %c0_41 = arith.constant 0 : index
    %90 = vector.load %arg10[%c0_39, %c0_40, %c0_41] : memref<1x8x32xf32, #tpu.memory_space<vmem>>, vector<1x8x32xf32>
    %91 = vector.shape_cast %90 : vector<1x8x32xf32> to vector<8x32xf32>
    %92 = vector.shape_cast %89 : vector<8x32xf32> to vector<1x8x32xf32>
    tpu.vector_store %arg10[%c0_39, %c0_40, %c0_41], %92 {strides = array<i32>} : memref<1x8x32xf32, #tpu.memory_space<vmem>>, vector<1x8x32xf32>,
    return
  }
  func.func @transform_0(%arg0: i32, %arg1: i32) -> (i32, i32, i32) {
    %c0_i32 = arith.constant 0 : i32
    %c0_i32_0 = arith.constant 0 : i32
    %c0_i32_1 = arith.constant 0 : i32
    return %arg0, %c0_i32, %c0_i32_0 : i32, i32, i32
  }
  func.func @transform_1(%arg0: i32, %arg1: i32) -> (i32, i32, i32) {
    %c0_i32 = arith.constant 0 : i32
    %c0_i32_0 = arith.constant 0 : i32
    %c0_i32_1 = arith.constant 0 : i32
    return %arg0, %c0_i32, %c0_i32_0 : i32, i32, i32
  }
  func.func @transform_2(%arg0: i32, %arg1: i32) -> (i32, i32) {
    %c0_i32 = arith.constant 0 : i32
    %c0_i32_0 = arith.constant 0 : i32
    %c0_i32_1 = arith.constant 0 : i32
    return %c0_i32, %c0_i32_0 : i32, i32
  }
  func.func @transform_3(%arg0: i32, %arg1: i32) -> (i32, i32) {
    %c0_i32 = arith.constant 0 : i32
    %c0_i32_0 = arith.constant 0 : i32
    %c0_i32_1 = arith.constant 0 : i32
    return %c0_i32, %c0_i32_0 : i32, i32
  }
  func.func @transform_4(%arg0: i32, %arg1: i32) -> (i32, i32) {
    %c0_i32 = arith.constant 0 : i32
    %c0_i32_0 = arith.constant 0 : i32
    %c0_i32_1 = arith.constant 0 : i32
    return %c0_i32, %c0_i32_0 : i32, i32
  }
  func.func @transform_5(%arg0: i32, %arg1: i32) -> (i32, i32) {
    %c0_i32 = arith.constant 0 : i32
    %c0_i32_0 = arith.constant 0 : i32
    %c0_i32_1 = arith.constant 0 : i32
    return %c0_i32, %c0_i32_0 : i32, i32
  }
  func.func @transform_6(%arg0: i32, %arg1: i32) -> (i32, i32) {
    %c0_i32 = arith.constant 0 : i32
    %c0_i32_0 = arith.constant 0 : i32
    %c0_i32_1 = arith.constant 0 : i32
    return %c0_i32, %c0_i32_0 : i32, i32
  }
  func.func @transform_7(%arg0: i32, %arg1: i32) -> (i32, i32) {
    %c0_i32 = arith.constant 0 : i32
    %c0_i32_0 = arith.constant 0 : i32
    %c0_i32_1 = arith.constant 0 : i32
    return %c0_i32, %c0_i32_0 : i32, i32
  }
  func.func @transform_8(%arg0: i32, %arg1: i32) -> (i32, i32, i32) {
    %c0_i32 = arith.constant 0 : i32
    %c0_i32_0 = arith.constant 0 : i32
    return %arg0, %arg1, %c0_i32 : i32, i32, i32
  }
}

</mosaic_0001>

<bundles_post_ra>
// kernel: tpu_custom_call.1
= control target key start
LH: loop header
LB: loop body
LE: loop exit
PB: predicated region body
PF: predicated region fallthrough
CT: control target
= control target key end

     0   :  { %s2138_s0 = inlined_call_operand.hbm [shape: f32[2,1,8], index: 0, kind: input, shape index: {}]   ;;  %s2139_s1 = inlined_call_operand.hbm [shape: f32[2,8,32], index: 1, kind: input, shape index: {}]   ;;  %s2140_s2 = inlined_call_operand.hbm [shape: bf16[32,32], index: 2, kind: input, shape index: {}]   ;;  %s2141_s3 = inlined_call_operand.vmem [shape: f32[1,32], index: 3, kind: input, shape index: {}]   ;;  %s2142_s4 = inlined_call_operand.hbm [shape: bf16[32,32], index: 4, kind: input, shape index: {}]   ;;  %s2143_s5 = inlined_call_operand.vmem [shape: f32[1,32], index: 5, kind: input, shape index: {}]   ;;  %s2144_s6 = inlined_call_operand.vmem [shape: bf16[32,32], index: 6, kind: input, shape index: {}]   ;;  %s2145_s7 = inlined_call_operand.vmem [shape: f32[1,32], index: 7, kind: input, shape index: {}]   ;;  %s2146_s8 = inlined_call_operand.hbm [shape: f32[2,8,32], index: 8, kind: output, shape index: {}]  }
   0x1   :  { %2154 = sst [smem:[#allocation21_spill]] %s2138_s0 }
   0x2   :  { %2155 = sst [smem:[#allocation22_spill]] %s2140_s2 }
   0x3   :  { %2156 = sst [smem:[#allocation23_spill]] %s2142_s4 }
   0x4   :  { %13 = vsyncpa [#allocation5], 0 }
   0x5   :  { %15 = vsyncpa [#allocation5 + $0x1], 0 }
   0x6   :  { %16 = vsyncpa [#allocation8], 0 }
   0x7   :  { %18 = vsyncpa [#allocation8 + $0x1], 0 }
   0x8   :  { %19 = vsyncpa [#allocation11], 0 }
   0x9   :  { %20 = vsyncpa [#allocation6], 0 }
   0xa   :  { %22 = vsyncpa [#allocation6 + $0x1], 0  ;;  %s1750_s27 = smov 0   ;;  %s1752_s28 = smov 0  }
   0xb   :  { %s1754_s29 = smov 0   ;;  %s1756_s30 = smov 0  }
   0xc   :  { %s1758_s9 = smov 0   ;;  %s1760_s10 = smov 0  }
   0xd LB: > { %2157 = sst [smem:[#allocation18_spill]] %s1668_s27  ;;  %s1781_s11 = sadd.s32 4294967295, %s1688_s10   ;;  %s1688_s10 = sphi %s1760_s10, %s28_s10   ;;  %s1684_s9 = sphi %s1758_s9, %s2187_s9   ;;  %s1680_s30 = sphi %s1756_s30, %s2186_s30   ;;  %s1676_s29 = sphi %s1754_s29, %s2185_s29   ;;  %s1672_s28 = sphi %s1752_s28, %s2184_s28   ;;  %s1668_s27 = sphi %s1750_s27, %s2183_s27  }
   0xe   : > { %s1219_s12 = sadd.s32 4294967294, %s1688_s10   ;;  %p60_p0 = scmp.ne.s32.totalorder %s1672_s28, %s1668_s27 }
   0xf   : > { %p2147_p1 = scmp.eq.s32.totalorder %s1781_s11, 0  ;;  %p244_p3 = scmp.eq.s32.totalorder %s1219_s12, 1 }
  0x10   : > { %p1220_p5 = scmp.ge.s32.totalorder %s1688_s10, 1  ;;  %p251_p7 = scmp.lt.s32.totalorder %s1688_s10, 3 }
  0x11   : > { %p1790_p4 = por %p2147_p1, %p60_p0  ;;  %p1795_p6 = por %p244_p3, %p60_p0 }
  0x12   : > { %p1800_p8 = pnand %p1220_p5, %p251_p7  ;;  %s1690_s16 = smov [#allocation9]  }
  0x13   : > { %s2158_s13 = scalar_select %p1790_p4, 1, 0 }
  0x14   : > { %s2159_s14 = scalar_select %p1795_p6, 1, 0 }
  0x15   : > { %s2161_s15 = scalar_select %p1800_p8, 1, 0 }
  0x16   : > { %2160 = sst [smem:[#allocation19_spill]] %s2159_s14  ;;  %s263_s17 = sshll.u32 %s1690_s16, 4  ;;  %s1804_s17 = int_to_ptr.vmem [resolvable:$true] %s263_s17 }
  0x17   : > { %p1370_p9 = pneg %p1800_p8  ;;  %s1691_s19 = smov [#allocation10]  }
  0x18   : > { %s279_s20 = sshll.u32 %s1691_s19, 4  ;;  %s2163_s2 = sld [smem:[#allocation22_spill]]  ;;  %s1815_s20 = int_to_ptr.vmem [resolvable:$true] %s279_s20 }
  0x19   : > { %p1811_p11 = pnand %p1370_p9, %p2147_p1 }
  0x1b   : > { %p1480_p13 = pneg %p1811_p11 }
  0x1e   : > { %s1478_s23 = scalar_lea.hbm %s2163_s2, 256 }
  0x1f   : > { %p1479_p12 = scmp.ne.s32.totalorder %s2163_s2, %s1478_s23  ;;  %p1485_p5 = scmp.lt.u32.totalorder %s1478_s23, %s2163_s2 }
  0x21   : > { %p1481_p0 = pnand %p1480_p13, %p1479_p12 }
  0x23   : > { %p1482_p3 = pneg %p1481_p0 }
  0x25   : > { %p1487_p7 = pnand %p1485_p5, %p1482_p3 }
  0x27   : > { %1490 = shalt.err (!%p1487_p7)
}
  0x28   : > { %s1491_s16 = scalar_lea.vmem %s1804_s17, 256  ;;  %p1499_p2 = scmp.lt.s32.totalorder %s1804_s17, %s1804_s17 }
  0x29   : > { %p1492_p9 = scmp.ne.s32.totalorder %s1804_s17, %s1491_s16  ;;  %p1500_p12 = scmp.lt.s32.totalorder %s1491_s16, %s1491_s16 }
  0x2b   : > { %p1494_p10 = pnand %p1492_p9, %p1480_p13  ;;  %p1501_p0 = por %p1500_p12, %p1499_p2 }
  0x2d   : > { %p1495_p1 = pneg %p1494_p10 }
  0x2f   : > { %p1502_p6 = pnand %p1501_p0, %p1495_p1 }
  0x31   : > { %1505 = shalt.err (!%p1502_p6)
}
  0x32   : > { %s1692_s19 = smov 64   ;;  %s1693_s21 = smov 4  }
  0x33   : > { %1373 = dma.hbm_to_vmem [thread:$0]  (!%p1811_p11), %s2163_s2, 256, %s1804_s17, [#allocation8], %s1692_s19, %s1692_s19, %s1693_s21  }
  0x34   : > { %s2164_s4 = sld [smem:[#allocation23_spill]] }
  0x3a   : > { %s1506_s26 = scalar_lea.hbm %s2164_s4, 256 }
  0x3b   : > { %p1507_p2 = scmp.ne.s32.totalorder %s2164_s4, %s1506_s26  ;;  %p1513_p10 = scmp.lt.u32.totalorder %s1506_s26, %s2164_s4 }
  0x3d   : > { %p1509_p1 = pnand %p1507_p2, %p1480_p13 }
  0x3f   : > { %p1510_p6 = pneg %p1509_p1 }
  0x41   : > { %p1515_p3 = pnand %p1513_p10, %p1510_p6 }
  0x43   : > { %1518 = shalt.err (!%p1515_p3)
}
  0x44   : > { %s1519_s17 = scalar_lea.vmem %s1815_s20, 256  ;;  %p1527_p12 = scmp.lt.s32.totalorder %s1815_s20, %s1815_s20 }
  0x45   : > { %p1520_p5 = scmp.ne.s32.totalorder %s1815_s20, %s1519_s17  ;;  %p1528_p0 = scmp.lt.s32.totalorder %s1519_s17, %s1519_s17 }
  0x47   : > { %p1522_p7 = pnand %p1520_p5, %p1480_p13  ;;  %p1529_p2 = por %p1528_p0, %p1527_p12 }
  0x49   : > { %p1523_p9 = pneg %p1522_p7 }
  0x4b   : > { %p1530_p1 = pnand %p1529_p2, %p1523_p9 }
  0x4d   : > { %1533 = shalt.err (!%p1530_p1)
}
  0x4e   : > { %1376 = dma.hbm_to_vmem [thread:$0]  (!%p1811_p11), %s2164_s4, 256, %s1815_s20, [#allocation11], %s1692_s19, %s1692_s19, %s1693_s21  }
  0x4f   : > { %s40_s22 = sadd.s32 1, %s1684_s9  ;;  %s47_s23 = sadd.s32 1, %s1676_s29 }
  0x50   : > { %p42_p13 = scmp.ge.s32.totalorder %s40_s22, 2  ;;  %p54_p6 = scmp.ne.s32.totalorder %s1676_s29, %s1672_s28 }
  0x51   : > { %p55_p10 = scmp.eq.s32.totalorder %s1688_s10, 0  ;;  %p1390_p3 = scmp.lt.s32.totalorder %s1688_s10, 2 }
  0x52   : > { %s2189_s22 = smov (%p42_p13, %s40_s22), 0  ;;  %p2166_p7 = scmp.eq.s32.totalorder %s1781_s11, 1 }
  0x53   : > { %2165 = sst [smem:[#allocation20_spill]] %s2189_s22  ;;  %p56_p5 = por %p55_p10, %p54_p6 }
  0x54   : > { %p1879_p9 = por %p2166_p7, %p54_p6  ;;  %s44_s24 = ssub.s32 %s1684_s9, %s2189_s22 }
  0x55   : > { %s1886_s25 = sand.u32 1, %s1676_s29   ;;  %p45_p11 = scmp.eq.s32.totalorder %s44_s24, 0 }
  0x56   : > { %s2167_s18 = scalar_select %p1879_p9, 1, 0 }
  0x57   : > { %s1224_s20 = sshll.u32 %s1684_s9, 4  ;;  %s2168_s0 = sld [smem:[#allocation21_spill]] }
  0x58   : > { %s1890_s19 = scalar_select %p45_p11, %s1676_s29, %s47_s23  }
  0x59   : > { %s305_s16 = scalar_lea.vmem [#allocation4], %s1886_s25  ;;  %p1902_p12 = pnand %p1390_p3, %p56_p5 }
  0x5a   : > { %s312_s17 = sshll.u32 %s305_s16, 4  ;;  %s1225_s23 = sshll.u32 %s1886_s25, 3  ;;  %s1898_s17 = int_to_ptr.vmem [resolvable:$true] %s312_s17 }
  0x5b   : > { %s303_s24 = scalar_lea.sflag [#allocation5], %s1886_s25  ;;  %p1536_p2 = pneg %p1902_p12 }
  0x5d   : > { %s1895_s12 = scalar_lea.hbm %s2168_s0, %s1224_s20  ;;  %s1539_s16 = scalar_lea.hbm %s2168_s0, 32 }
  0x5e   : > { %s1534_s20 = scalar_lea.hbm %s1895_s12, 16  ;;  %p1540_p6 = scmp.lt.u32.totalorder %s1895_s12, %s2168_s0 }
  0x5f   : > { %p1535_p0 = scmp.ne.s32.totalorder %s1895_s12, %s1534_s20  ;;  %p1541_p10 = scmp.lt.u32.totalorder %s1539_s16, %s1534_s20 }
  0x60   : > { %p1543_p5 = scmp.lt.u32.totalorder %s1534_s20, %s1895_s12 }
  0x61   : > { %p1537_p1 = pnand %p1536_p2, %p1535_p0  ;;  %p1542_p3 = por %p1541_p10, %p1540_p6 }
  0x63   : > { %p1538_p13 = pneg %p1537_p1  ;;  %p1544_p7 = por %p1543_p5, %p1542_p3 }
  0x65   : > { %p1545_p11 = pnand %p1544_p7, %p1538_p13 }
  0x67   : > { %1548 = shalt.err (!%p1545_p11)
}
  0x68   : > { %s1549_s14 = scalar_lea.vmem %s1898_s17, 16  ;;  %s1694_s21 = smov [#allocation4]  }
  0x69   : > { %p1550_p0 = scmp.ne.s32.totalorder %s1898_s17, %s1549_s14  ;;  %s1554_s26 = sshll.u32 %s1694_s21, 4  ;;  %s1555_s26 = int_to_ptr.vmem [resolvable:$false] %s1554_s26 }
  0x6a   : > { %s1556_s2 = scalar_lea.vmem %s1555_s26, 32  ;;  %p1557_p4 = scmp.lt.s32.totalorder %s1898_s17, %s1555_s26 }
  0x6b   : > { %p1552_p1 = pnand %p1550_p0, %p1536_p2  ;;  %p1558_p6 = scmp.lt.s32.totalorder %s1556_s2, %s1549_s14 }
  0x6d   : > { %p1553_p9 = pneg %p1552_p1  ;;  %p1559_p10 = por %p1558_p6, %p1557_p4 }
  0x6f   : > { %p1560_p3 = pnand %p1559_p10, %p1553_p9 }
  0x71   : > { %1563 = shalt.err (!%p1560_p3)
}
  0x72   : > { %1380 = dma.hbm_to_vmem [thread:$0]  (!%p1902_p12), %s1895_s12, 16, %s1898_s17, %s303_s24  }
  0x73   : > { %s1226_s4 = sshll.u32 %s1684_s9, 7  ;;  %s323_s14 = scalar_lea.vmem [#allocation7], %s1225_s23 }
  0x74   : > { %s1938_s21 = scalar_lea.hbm %s2139_s1, %s1226_s4  ;;  %s330_s26 = sshll.u32 %s323_s14, 4  ;;  %s331_s26 = int_to_ptr.vmem [resolvable:$true] %s330_s26 }
  0x75   : > { %s2170_s2 = sand.u32 1, %s1688_s10   ;;  %s1564_s22 = scalar_lea.hbm %s1938_s21, 128 }
  0x76   : > { %s320_s0 = scalar_lea.sflag [#allocation8], %s2170_s2  ;;  %p1565_p4 = scmp.ne.s32.totalorder %s1938_s21, %s1564_s22 }
  0x77   : > { %s1569_s24 = scalar_lea.hbm %s2139_s1, 256  ;;  %p1570_p5 = scmp.lt.u32.totalorder %s1938_s21, %s2139_s1 }
  0x78   : > { %p1567_p9 = pnand %p1565_p4, %p1536_p2  ;;  %p1571_p7 = scmp.lt.u32.totalorder %s1569_s24, %s1564_s22 }
  0x79   : > { %p1573_p0 = scmp.lt.u32.totalorder %s1564_s22, %s1938_s21 }
  0x7a   : > { %p1568_p13 = pneg %p1567_p9  ;;  %p1572_p11 = por %p1571_p7, %p1570_p5 }
  0x7c   : > { %p1574_p1 = por %p1573_p0, %p1572_p11 }
  0x7e   : > { %p1575_p6 = pnand %p1574_p1, %p1568_p13 }
  0x80   : > { %1578 = shalt.err (!%p1575_p6)
}
  0x81   : > { %s1579_s23 = scalar_lea.vmem %s331_s26, 128  ;;  %s1695_s20 = smov [#allocation7]  }
  0x82   : > { %p1580_p10 = scmp.ne.s32.totalorder %s331_s26, %s1579_s23  ;;  %s1584_s16 = sshll.u32 %s1695_s20, 4  ;;  %s1585_s16 = int_to_ptr.vmem [resolvable:$false] %s1584_s16 }
  0x83   : > { %s1586_s14 = scalar_lea.vmem %s1585_s16, 256  ;;  %p1587_p9 = scmp.lt.s32.totalorder %s331_s26, %s1585_s16 }
  0x84   : > { %p1582_p3 = pnand %p1580_p10, %p1536_p2  ;;  %p1588_p8 = scmp.lt.s32.totalorder %s1586_s14, %s1579_s23 }
  0x86   : > { %p1583_p4 = pneg %p1582_p3  ;;  %p1589_p5 = por %p1588_p8, %p1587_p9 }
  0x88   : > { %p1590_p7 = pnand %p1589_p5, %p1583_p4 }
  0x8a   : > { %1593 = shalt.err (!%p1590_p7)
}
  0x8b   : > { %1383 = dma.hbm_to_vmem [thread:$0]  (!%p1902_p12), %s1938_s21, 128, %s331_s26, %s320_s0  }
  0x8c   : > { %p2171_p13 = scmp.ne.s32.totalorder %s2161_s15, 0 }
  0x8d   : > { %s1966_s22 = sand.u32 (!%p2171_p13), 1, %s1672_s28   ;;  %p2172_p2 = scmp.ne.s32.totalorder (!%p2171_p13), %s2158_s13, 0 }
  0x8e   : > { %339 = sbr.rel (%p2171_p13) target bundleno = 1252 (0x4e4), region = 52  ;;  %s342_s2 = scalar_lea.sflag (!%p2171_p13), [#allocation5], %s1966_s22 }
  0x8f   : > { %s344_s12 = scalar_lea.vmem (!%p2171_p13), [#allocation4], %s1966_s22 }
  0x95   : > { %1647 = dma.done.wait (%p2172_p2), %s342_s2, 16  }
  0x96   : > { %1649 = vsyncadd (%p2172_p2), %s342_s2, 4294967280  ;;  %s349_s0 = sand.u32 1, %s1781_s11   ;;  %s1228_s15 = sshll.u32 %s1966_s22, 3 }
  0x97   : > { %s350_s27 = scalar_lea.sflag [#allocation8], %s349_s0  ;;  %s353_s21 = scalar_lea.vmem [#allocation7], %s1228_s15 }
  0x98   : > { %1651 = dma.done.wait (%p2172_p2), %s350_s27, 128  }
  0x99   : > { %1653 = vsyncadd (%p2172_p2), %s350_s27, 4294967168  ;;  %p2173_p8 = scmp.eq.s32.totalorder %s1781_s11, 0 }
  0x9b   : > { %1655 = dma.done.wait (%p2173_p8), [#allocation8], 256   ;;  %p2174_p12 = pmov %p2173_p8 }
  0x9c   : > { %p2175_p11 = pmov %p2173_p8 }
  0x9d   : > { %1657 = vsyncadd (%p2174_p12), [#allocation8], 4294967040 }
  0x9e   : > { %1659 = dma.done.wait (%p2175_p11), [#allocation11], 256   ;;  %p2176_p0 = pmov %p2173_p8 }
  0x9f   : > { %v1696_v0 = vmov 0.0   ;;  %vm1697_vm0 = vmmov 0   ;;  %v1454_v1 = vld [vmem:[#allocation10] sm:$0xff]   ;;  %v1455_v2 = vld [vmem:[#allocation10 + $0x8] sm:$0xff]   ;;  %vm428_vm1 = vcmask 261120   ;;  %v1456_v5 = vld [vmem:[#allocation9] sm:$0xff]  }
  0xa0   : > { %1661 = vsyncadd (%p2176_p0), [#allocation11], 4294967040  ;;  %1284 = vmatprep.subr.bf16.mxu0 %v1696_v0  ;;  %1288 = vmatprep.mubr.msk.bf16.mxu0 %vm1697_vm0, %v1696_v0  ;;  %v403_v3 = vld [vmem:[%s353_s21] sm:$0xff]  ;;  %v1457_v6 = vld [vmem:[#allocation9 + $0x8] sm:$0xff]   ;;  %vm536_vm2 = vcmask 257024   ;;  %vm622_vm3 = vcmask 64512  }
  0xa1   : > { %1292 = vmatprep.subr.bf16.mxu1 %v1696_v0  ;;  %1296 = vmatprep.mubr.msk.bf16.mxu1 %vm1697_vm0, %v1696_v0  ;;  %v404_v4 = vpack.c.bf16 %v403_v3, %v403_v3  ;;  %v1458_v7 = vld [vmem:[%s2144_s6] sm:$0xff]   ;;  %v1459_v8 = vld [vmem:[%s2144_s6 + $0x8] sm:$0xff]   ;;  %s1698_s20 = smov 112   ;;  %s1699_s16 = smov 120   ;;  %vm682_vm4 = vcmask 1043456   ;;  %vm1078_vm5 = vcmask 130048  }
  0xa2   : > { %1285 = vmatpush3.bf16.msra.mxu0 %v1454_v1  ;;  %1293 = vmatpush3.bf16.msra.mxu1 %v1458_v7  ;;  %v1232_v9 = vld [vmem:[%s2143_s5] ss:$0 sm:$0xff]  ;;  %s1700_s14 = smov 104   ;;  %s1702_s27 = smov 16   ;;  %vm1080_vm6 = vcmask 195584  }
  0xa3   : > { %1286 = vmatprep.subr.bf16.mxu0 %v1696_v0  ;;  %1294 = vmatprep.subr.bf16.mxu1 %v1696_v0  ;;  %v1240_v16 = vld [vmem:[%s2141_s3] ss:$0 sm:$0xff]  ;;  %s1703_s21 = smov 24   ;;  %s1256_s11 = sshll.u32 %s1680_s30, 7 }
  0xa4   : > { %v1236_v27 = vld [vmem:[%s2145_s7] ss:$0 sm:$0xff]  ;;  %s397_s13 = scalar_lea.vmem [#allocation12], %s1228_s15  ;;  %s2088_s25 = scalar_lea.hbm %s2146_s8, %s1256_s11 }
  0xa5   : > { %v1244_v45 = vld [vmem:[%s344_s12] ss:$0 sm:$0xff]  ;;  %s1701_s12 = smov 8   ;;  %s1098_s26 = sshll.u32 %s397_s13, 4  ;;  %s2090_s26 = int_to_ptr.vmem [resolvable:$true] %s1098_s26 }
  0xa6   : > { %1287 = vmatpush3.bf16.msra.mxu0 %v1455_v2  ;;  %1295 = vmatpush3.bf16.msra.mxu1 %v1459_v8  ;;  %s1084_s30 = scalar_lea.sflag [#allocation6], %s1966_s22  ;;  %s1594_s15 = scalar_lea.vmem %s2090_s26, 128 }
  0xa7   : > { %1300 = vmatprep.subr.bf16.mxu0 %v1696_v0  ;;  %1308 = vmatprep.subr.bf16.mxu1 %v1696_v0  ;;  %p1595_p1 = scmp.ne.s32.totalorder %s2090_s26, %s1594_s15  ;;  %p2177_p6 = scmp.ne.s32.totalorder %s2167_s18, 0 }
  0xa8   : > { %s1704_s4 = smov [#allocation12]  }
  0xa9   : > { %1289 = vmatmul.mubr.msk.bf16.vlgmr.msra.gmra.mrb[0].mxu0 %vm428_vm1, %v404_v4  ;;  %1297 = vmatmul.mubr.msk.bf16.vlgmr.msra.gmra.mrb[0].mxu1 %vm428_vm1, %v404_v4  ;;  %p1596_p10 = pnand %p1595_p1, %p2177_p6  ;;  %s1598_s23 = sshll.u32 %s1704_s4, 4  ;;  %s1599_s23 = int_to_ptr.vmem [resolvable:$false] %s1598_s23 }
  0xaa   : > { %1301 = vmatpush3.bf16.msra.mxu0 %v1456_v5  ;;  %1304 = vmatprep.mubr.msk.bf16.mxu0 %vm1697_vm0, %v1696_v0  ;;  %p1601_p4 = scmp.lt.s32.totalorder %s2090_s26, %s1599_s23 }
  0xab   : > { %1302 = vmatprep.subr.bf16.mxu0 %v1696_v0  ;;  %1310 = vmatprep.mubr.msk.bf16.mxu1 %vm1697_vm0, %v1696_v0  ;;  %p1597_p3 = pneg %p1596_p10 }
  0xae   : > { %1303 = vmatpush3.bf16.msra.mxu0 %v1457_v6 }
  0xaf   : > { %1314 = vmatprep.subr.bf16.mxu0 %v1696_v0 }
  0xb1   : > { %1305 = vmatmul.mubr.msk.bf16.vlgmr.msra.gmra.mrb[4].mxu0 %vm428_vm1, %v404_v4 }
  0xb2   : > { %1316 = vmatprep.mubr.msk.bf16.mxu0 %vm1697_vm0, %v1696_v0 }
 0x17c   : > { %v466_v10 = vpop.f32.mrb[0].mxu0  ;;  %v529_v28 = vpop.f32.mrb[0].mxu1 }
 0x17d   : > { %v467_v11 = vadd.f32 %v1232_v9, %v466_v10  ;;  %v1290_v12 = vpop.f32.mrb[1].mxu0  ;;  %v530_v29 = vadd.f32 %v1236_v27, %v529_v28  ;;  %v1298_v30 = vpop.f32.mrb[1].mxu1 }
 0x17e   : > { %v469_v13 = vpop.f32.mrb[2].mxu0  ;;  %v532_v31 = vpop.f32.mrb[2].mxu1 }
 0x17f   : > { %v535_v14 = vpack.c.bf16 %v467_v11, %v467_v11  ;;  %v1291_v15 = vpop.f32.mrb[3].mxu0  ;;  %v538_v32 = vpack.c.bf16 %v530_v29, %v530_v29  ;;  %v1299_v33 = vpop.f32.mrb[3].mxu1 }
 0x181   : > { %537 = vst.msk [vmem:[#allocation2] sm:$0xf] %vm536_vm2, %v535_v14  ;;  %539 = vst.msk [vmem:[#allocation3] sm:$0xf] %vm536_vm2, %v538_v32 }
 0x184   : > { %v605_v17 = vpop.f32.mrb[4].mxu0 }
 0x185   : > { %v606_v18 = vadd.f32 %v1240_v16, %v605_v17  ;;  %v1306_v19 = vpop.f32.mrb[5].mxu0 }
 0x186   : > { %v608_v20 = vpop.f32.mrb[6].mxu0 }
 0x187   : > { %v611_v21 = vmul.f32 0.35355338, %v606_v18  ;;  %v1307_v22 = vpop.f32.mrb[7].mxu0 }
 0x188   : > { %v620_v23 = vld [vmem:[#allocation2] sm:$0xf]  ;;  %v621_v34 = vld [vmem:[#allocation3] sm:$0xf] }
 0x189   : > { %v627_v24 = vsel %vm622_vm3, %v620_v23, 0  ;;  %v1247_v25 = vcombine.low %v620_v23, %v620_v23  ;;  %v612_v26 = vpack.c.bf16 %v611_v21, %v611_v21  ;;  %v684_v35 = vsel %vm682_vm4, %v621_v34, 0 }
 0x18a   : > { %1309 = vmatpush3.bf16.xpose.msra.mxu1 %v627_v24  ;;  %1315 = vmatpush3.bf16.msra.mxu0 %v684_v35  ;;  %v1249_v7 = vcombine.low %v621_v34, %v621_v34 }
 0x18b   : > { %847 = vrot.lane.b32.xlu1 %v1247_v25, %s1698_s20  ;;  %734 = vrot.lane.b32.xlu0 %v1247_v25, %s1699_s16 }
 0x18c   : > { %1320 = vmatprep.subr.bf16.mxu1 %v1696_v0  ;;  %1326 = vmatprep.subr.bf16.mxu0 %v1696_v0 }
 0x18f   : > { %845 = vrot.lane.b32.xlu1 %v612_v26, %s1698_s20  ;;  %729 = vrot.lane.b32.xlu0 %v612_v26, %s1699_s16 }
 0x191   : > { %1311 = vmatmul.mubr.msk.bf16.vlgmr.msra.gmra.mrb[4].mxu1 %vm622_vm3, %v612_v26 }
 0x192   : > { %1322 = vmatprep.mubr.msk.bf16.mxu1 %vm1697_vm0, %v1696_v0 }
 0x193   : > { %955 = vrot.lane.b32.xlu1 %v612_v26, %s1700_s14  ;;  %957 = vrot.lane.b32.xlu0 %v1247_v25, %s1700_s14 }
 0x1fd   : > { %v735_v36 = vpop.permute.xlu0 %734  ;;  %v848_v38 = vpop.permute.xlu1 %847 }
 0x1fe   : > { %v740_v37 = vsel %vm622_vm3, %v735_v36, 0  ;;  %v853_v40 = vsel %vm622_vm3, %v848_v38, 0 }
 0x1ff   : > { %1321 = vmatpush3.bf16.xpose.msra.mxu1 %v740_v37 }
 0x200   : > { %1332 = vmatprep.subr.bf16.mxu1 %v1696_v0 }
 0x201   : > { %v730_v39 = vpop.permute.xlu0 %729  ;;  %v846_v42 = vpop.permute.xlu1 %845 }
 0x205   : > { %v958_v41 = vpop.permute.xlu0 %957  ;;  %v956_v44 = vpop.permute.xlu1 %955 }
 0x206   : > { %1323 = vmatmul.mubr.msk.bf16.vlgmr.msra.gmra.mrb[8].mxu1 %vm622_vm3, %v730_v39  ;;  %v963_v43 = vsel %vm622_vm3, %v958_v41, 0 }
 0x207   : > { %1333 = vmatpush3.bf16.xpose.msra.mxu1 %v853_v40  ;;  %1334 = vmatprep.mubr.msk.bf16.mxu1 %vm1697_vm0, %v1696_v0 }
 0x208   : > { %1344 = vmatprep.subr.bf16.mxu1 %v1696_v0 }
 0x20e   : > { %1335 = vmatmul.mubr.msk.bf16.vlgmr.msra.gmra.mrb[12].mxu1 %vm622_vm3, %v846_v42 }
 0x20f   : > { %1345 = vmatpush3.bf16.xpose.msra.mxu1 %v963_v43  ;;  %1346 = vmatprep.mubr.msk.bf16.mxu1 %vm1697_vm0, %v1696_v0 }
 0x216   : > { %1347 = vmatmul.mubr.msk.bf16.vlgmr.msra.gmra.mrb[16].mxu1 %vm622_vm3, %v956_v44 }
 0x264   : > { %v663_v46 = vpop.f32.mrb[4].mxu1 }
 0x265   : > { %v664_v47 = vadd.f32 %v1244_v45, %v663_v46  ;;  %v1312_v48 = vpop.f32.mrb[5].mxu1 }
 0x266   : > { %v666_v49 = vpop.f32.mrb[6].mxu1 }
 0x267   : > { %v1313_v50 = vpop.f32.mrb[7].mxu1  ;;  %v669_v51 = vsel %vm622_vm3, %v664_v47, -inf }
 0x268   : > { %670 = vmax.xlane.f32.xlu0 %v669_v51 }
 0x2d9   : > { %v776_v52 = vpop.f32.mrb[8].mxu1 }
 0x2da   : > { %v777_v53 = vadd.f32 %v1244_v45, %v776_v52  ;;  %v1324_v54 = vpop.f32.mrb[9].mxu1 }
 0x2db   : > { %v779_v55 = vpop.f32.mrb[10].mxu1 }
 0x2dc   : > { %v1325_v56 = vpop.f32.mrb[11].mxu1  ;;  %v782_v57 = vsel %vm622_vm3, %v777_v53, -inf }
 0x2dd   : > { %783 = vmax.xlane.f32.xlu1 %v782_v57 }
 0x2e1   : > { %v889_v58 = vpop.f32.mrb[12].mxu1 }
 0x2e2   : > { %v890_v59 = vadd.f32 %v1244_v45, %v889_v58  ;;  %v1336_v60 = vpop.f32.mrb[13].mxu1 }
 0x2e3   : > { %v892_v61 = vpop.f32.mrb[14].mxu1 }
 0x2e4   : > { %v1337_v62 = vpop.f32.mrb[15].mxu1  ;;  %v895_v63 = vsel %vm622_vm3, %v890_v59, -inf }
 0x2e5   : > { %896 = vmax.xlane.f32.xlu0 %v895_v63 }
 0x2e9   : > { %v999_v1 = vpop.f32.mrb[16].mxu1 }
 0x2ea   : > { %v1000_v2 = vadd.f32 %v1244_v45, %v999_v1  ;;  %v1348_v3 = vpop.f32.mrb[17].mxu1 }
 0x2eb   : > { %v1002_v4 = vpop.f32.mrb[18].mxu1 }
 0x2ec   : > { %v1349_v5 = vpop.f32.mrb[19].mxu1  ;;  %v1005_v6 = vsel %vm622_vm3, %v1000_v2, -inf }
 0x2ed   : > { %1006 = vmax.xlane.f32.xlu0 %v1005_v6 }
 0x2ee   : > { %795 = vrot.lane.b32.xlu1 %v1249_v7, %s1699_s16 }
 0x2f2   : > { %1015 = vrot.lane.b32.xlu1 %v1249_v7, %s1700_s14 }
 0x2f5   : > { %v671_v8 = vpop.xlane.xlu0 %670 }
 0x2f6   : > { %v672_v9 = vsub.f32 %v664_v47, %v671_v8 }
 0x2f8   : > { %v673_v10 = vmul.f32 1.442695, %v672_v9 }
 0x2fa   : > { %1462 = vpow2.f32 %v673_v10 }
 0x303   : > { %905 = vrot.lane.b32.xlu0 %v1249_v7, %s1698_s20  ;;  %s1600_s20 = scalar_lea.vmem %s1599_s23, 256 }
 0x304   : > { %v1463_v11 = vpop.eup %1462  ;;  %p1602_p9 = scmp.lt.s32.totalorder %s1600_s20, %s1594_s15 }
 0x305   : > { %v678_v12 = vpack.c.bf16 %v1463_v11, %v1463_v11  ;;  %v675_v28 = vsel %vm622_vm3, %v1463_v11, 0.0 }
 0x306   : > { %p1603_p5 = por %p1602_p9, %p1601_p4 }
 0x307   : > { %1317 = vmatmul.mubr.msk.bf16.vlgmr.msra.gmra.mrb[8].mxu0 %vm622_vm3, %v678_v12 }
 0x308   : > { %1328 = vmatprep.mubr.msk.bf16.mxu0 %vm1697_vm0, %v1696_v0  ;;  %p1604_p7 = pnand %p1603_p5, %p1597_p3 }
 0x36a   : > { %v784_v13 = vpop.xlane.xlu1 %783 }
 0x36b   : > { %v785_v14 = vsub.f32 %v777_v53, %v784_v13 }
 0x36d   : > { %v786_v15 = vmul.f32 1.442695, %v785_v14 }
 0x36e   : > { %v796_v16 = vpop.permute.xlu1 %795 }
 0x36f   : > { %1464 = vpow2.f32 %v786_v15  ;;  %v801_v17 = vsel %vm682_vm4, %v796_v16, 0 }
 0x370   : > { %1327 = vmatpush3.bf16.msra.mxu0 %v801_v17 }
 0x371   : > { %1338 = vmatprep.subr.bf16.mxu0 %v1696_v0 }
 0x372   : > { %v897_v18 = vpop.xlane.xlu0 %896  ;;  %v1016_v31 = vpop.permute.xlu1 %1015 }
 0x373   : > { %v898_v19 = vsub.f32 %v890_v59, %v897_v18  ;;  %v1021_v34 = vsel %vm682_vm4, %v1016_v31, 0 }
 0x375   : > { %v899_v20 = vmul.f32 1.442695, %v898_v19 }
 0x377   : > { %1466 = vpow2.f32 %v899_v20 }
 0x379   : > { %v1465_v21 = vpop.eup %1464 }
 0x37a   : > { %v1007_v22 = vpop.xlane.xlu0 %1006  ;;  %v788_v23 = vsel %vm622_vm3, %v1465_v21, 0.0  ;;  %v791_v24 = vpack.c.bf16 %v1465_v21, %v1465_v21 }
 0x37b   : > { %v1008_v25 = vsub.f32 %v1000_v2, %v1007_v22  ;;  %789 = vadd.xlane.f32.xlu1 %v788_v23 }
 0x37c   : > { %1329 = vmatmul.mubr.msk.bf16.vlgmr.msra.gmra.mrb[12].mxu0 %vm622_vm3, %v791_v24 }
 0x37d   : > { %v1009_v26 = vmul.f32 1.442695, %v1008_v25  ;;  %1340 = vmatprep.mubr.msk.bf16.mxu0 %vm1697_vm0, %v1696_v0 }
 0x37e   : > { %v906_v27 = vpop.permute.xlu0 %905 }
 0x37f   : > { %1468 = vpow2.f32 %v1009_v26  ;;  %v911_v29 = vsel %vm682_vm4, %v906_v27, 0  ;;  %676 = vadd.xlane.f32.xlu1 %v675_v28 }
 0x380   : > { %1339 = vmatpush3.bf16.msra.mxu0 %v911_v29 }
 0x381   : > { %v1467_v30 = vpop.eup %1466  ;;  %1350 = vmatprep.subr.bf16.mxu0 %v1696_v0 }
 0x382   : > { %v901_v32 = vsel %vm622_vm3, %v1467_v30, 0.0  ;;  %v904_v33 = vpack.c.bf16 %v1467_v30, %v1467_v30 }
 0x383   : > { %902 = vadd.xlane.f32.xlu0 %v901_v32 }
 0x384   : > { %1341 = vmatmul.mubr.msk.bf16.vlgmr.msra.gmra.mrb[16].mxu0 %vm622_vm3, %v904_v33 }
 0x385   : > { %1351 = vmatpush3.bf16.msra.mxu0 %v1021_v34  ;;  %1352 = vmatprep.mubr.msk.bf16.mxu0 %vm1697_vm0, %v1696_v0 }
 0x389   : > { %v1469_v35 = vpop.eup %1468 }
 0x38a   : > { %v1011_v36 = vsel %vm622_vm3, %v1469_v35, 0.0  ;;  %v1014_v37 = vpack.c.bf16 %v1469_v35, %v1469_v35 }
 0x38b   : > { %1012 = vadd.xlane.f32.xlu0 %v1011_v36 }
 0x38c   : > { %1353 = vmatmul.mubr.msk.bf16.vlgmr.msra.gmra.mrb[20].mxu0 %vm622_vm3, %v1014_v37 }
 0x3da   : > { %v720_v38 = vpop.f32.mrb[8].mxu0 }
 0x3db   : > { %v1318_v39 = vpop.f32.mrb[9].mxu0 }
 0x3dc   : > { %v723_v40 = vpop.f32.mrb[10].mxu0 }
 0x3dd   : > { %v1319_v41 = vpop.f32.mrb[11].mxu0 }
 0x408   : > { %v790_v42 = vpop.xlane.xlu1 %789 }
 0x409   : > { %1470 = vrcp.f32 %v790_v42 }
 0x40c   : > { %v677_v62 = vpop.xlane.xlu1 %676 }
 0x410   : > { %v903_v43 = vpop.xlane.xlu0 %902 }
 0x411   : > { %1472 = vrcp.f32 %v903_v43 }
 0x413   : > { %v1471_v44 = vpop.eup %1470 }
 0x418   : > { %v1013_v48 = vpop.xlane.xlu0 %1012 }
 0x419   : > { %1474 = vrcp.f32 %v1013_v48 }
 0x41a   : > { %1476 = vrcp.f32 %v677_v62 }
 0x41b   : > { %v1473_v50 = vpop.eup %1472 }
 0x423   : > { %v1475_v56 = vpop.eup %1474 }
 0x424   : > { %v1477_v63 = vpop.eup %1476 }
 0x425   : > { %v727_v3 = vmul.f32 %v1477_v63, %v720_v38 }
 0x44f   : > { %v837_v45 = vpop.f32.mrb[12].mxu0 }
 0x450   : > { %v844_v46 = vmul.f32 %v1471_v44, %v837_v45  ;;  %v1330_v47 = vpop.f32.mrb[13].mxu0 }
 0x451   : > { %v840_v0 = vpop.f32.mrb[14].mxu0 }
 0x452   : > { %1066 = vrot.lane.b32.xlu0 %v844_v46, %s1701_s12  ;;  %v1331_v49 = vpop.f32.mrb[15].mxu0 }
 0x457   : > { %v947_v51 = vpop.f32.mrb[16].mxu0 }
 0x458   : > { %v954_v52 = vmul.f32 %v1473_v50, %v947_v51  ;;  %v1342_v53 = vpop.f32.mrb[17].mxu0 }
 0x459   : > { %v950_v54 = vpop.f32.mrb[18].mxu0 }
 0x45a   : > { %1070 = vrot.lane.b32.xlu1 %v954_v52, %s1702_s27  ;;  %v1343_v55 = vpop.f32.mrb[19].mxu0 }
 0x45f   : > { %v1057_v57 = vpop.f32.mrb[20].mxu0 }
 0x460   : > { %v1064_v58 = vmul.f32 %v1475_v56, %v1057_v57  ;;  %v1354_v59 = vpop.f32.mrb[21].mxu0 }
 0x461   : > { %v1060_v60 = vpop.f32.mrb[22].mxu0 }
 0x462   : > { %1074 = vrot.lane.b32.xlu1 %v1064_v58, %s1703_s21  ;;  %v1355_v61 = vpop.f32.mrb[23].mxu0 }
 0x4c4   : > { %v1067_v1 = vpop.permute.xlu0 %1066 }
 0x4c5   : > { %v1077_v4 = vsel %vm622_vm3, %v727_v3, %v1067_v1 }
 0x4cc   : > { %v1071_v2 = vpop.permute.xlu1 %1070 }
 0x4cd   : > { %v1079_v5 = vsel %vm1078_vm5, %v1077_v4, %v1071_v2 }
 0x4d4   : > { %v1075_v6 = vpop.permute.xlu1 %1074 }
 0x4d5   : > { %v1081_v7 = vsel %vm1080_vm6, %v1079_v5, %v1075_v6 }
 0x4d6   : > { %1082 = vst.msk [vmem:[%s397_s13] sm:$0xff] %vm428_vm1, %v1081_v7 }
 0x4d7   : > { %1607 = shalt.err (!%p1604_p7)
}
 0x4d8   : > { %s1608_s22 = scalar_lea.hbm %s2088_s25, 128  ;;  %s1612_s2 = scalar_lea.hbm %s2146_s8, 256 }
 0x4d9   : > { %p1609_p13 = scmp.ne.s32.totalorder %s2088_s25, %s1608_s22  ;;  %p1613_p12 = scmp.lt.u32.totalorder %s2088_s25, %s2146_s8 }
 0x4da   : > { %p1614_p11 = scmp.lt.u32.totalorder %s1612_s2, %s1608_s22  ;;  %p1616_p1 = scmp.lt.u32.totalorder %s1608_s22, %s2088_s25 }
 0x4db   : > { %p1610_p2 = pnand %p1609_p13, %p2177_p6 }
 0x4dc   : > { %p1615_p0 = por %p1614_p11, %p1613_p12 }
 0x4dd   : > { %p1611_p8 = pneg %p1610_p2 }
 0x4de   : > { %p1617_p10 = por %p1616_p1, %p1615_p0 }
 0x4e0   : > { %p1618_p3 = pnand %p1617_p10, %p1611_p8 }
 0x4e2   : > { %1621 = shalt.err (!%p1618_p3)
}
 0x4e3   : > { %1368 = dma.vmem_to_hbm [thread:$0]  (%p2177_p6), %s2090_s26, 128, %s2088_s25, %s1084_s30  }
 0x4e4 PF: > { %s2178_s27 = sld [smem:[#allocation18_spill]]  ;;  %s2179_s21 = sld [smem:[#allocation19_spill]] }
 0x4e5   : > { %p2181_p9 = scmp.ge.s32.totalorder %s1688_s10, 2 }
 0x4ea   : > { %s1110_s11 = sand.u32 1, %s2178_s27   ;;  %p2180_p4 = scmp.ne.s32.totalorder %s2179_s21, 0 }
 0x4eb   : > { %s1111_s13 = scalar_lea.sflag [#allocation6], %s1110_s11 }
 0x4ec   : > { %p1385_p5 = pnand %p2181_p9, %p2180_p4 }
 0x4ee   : > { %1663 = dma.done.wait (!%p1385_p5), %s1111_s13, 128  }
 0x4ef   : > { %1665 = vsyncadd (!%p1385_p5), %s1111_s13, 4294967168  ;;  %s28_s10 = sadd.s32 1, %s1688_s10   ;;  %s2182_s18 = sld [smem:[#allocation20_spill]] }
 0x4f0   : > { %p25_p7 = scmp.ge.s32.totalorder %s28_s10, 4   ;;  %s2183_s27 = smov %s1672_s28 }
 0x4f1   : > { %s2184_s28 = smov %s1676_s29  ;;  %s2185_s29 = smov %s1890_s19 }
 0x4f2   : > { %s2186_s30 = smov %s1684_s9  ;;  %27 = sbr.rel (!%p25_p7) target bundleno = 13 (0xd), region = 123 }
 0x4f5   : > { %s2187_s9 = smov %s2182_s18 }
 0x4f9   :  { %1116 = vsyncpa [#allocation5], 1 }
 0x4fa   :  { %1118 = vsyncpa [#allocation5 + $0x1], 1 }
 0x4fb   :  { %1119 = vsyncpa [#allocation8], 1 }
 0x4fc   :  { %1121 = vsyncpa [#allocation8 + $0x1], 1 }
 0x4fd   :  { %1122 = vsyncpa [#allocation11], 1 }
 0x4fe   :  { %1123 = vsyncpa [#allocation6], 1 }
 0x4ff   :  { %1125 = vsyncpa [#allocation6 + $0x1], 1 }

</bundles_post_ra>
